<compile_context>
chip_gen: v5e
topology: v5e:2x2
jax: 0.10.0
libtpu: 0.0.40
codegen_flags: <defaults>
</compile_context>

<pallas_src>
import jax
import jax.numpy as jnp
from jax.experimental import pallas as pl
from jax.experimental.pallas import tpu as pltpu


LANES = 512            # lane-dense last dim (multiple of 128 -> unmasked full-width vst)
BLOCK_ROWS = 2048      # 2048 * 512 * 4B = 4 MiB per f32 block
MIN_SPLIT_BYTES = 1 << 20   # above ~1 MiB, always use >= 2 blocks (v7x: 2 TensorCores)


def mish_kernel(x_ref, o_ref):
    x = x_ref[...].astype(jnp.float32)
    # e = exp(x), clamped so the non-selected branch of the final select never
    # produces inf/inf = nan.
    e = jnp.exp(jnp.minimum(x, 20.0))
    n = e * (e + 2.0)
    d = n + 2.0
    # tanh(softplus(x)) == n / (n + 2); EUP approx reciprocal + one Newton step
    # (2 cheap VPU ops) recovers ~f32-exact precision.
    r = pl.reciprocal(d, approx=True)
    r = r * (2.0 - d * r)
    # PyTorch softplus threshold: for x > 20, softplus(x) ~= x and tanh(.) ~= 1.
    t = jnp.where(x > 20.0, 1.0, n * r)
    o_ref[...] = (x * t).astype(o_ref.dtype)


def _mish_jnp(x):
    """Plain-XLA Mish for the tiny ragged tail (< 512 elements)."""
    xf = x.astype(jnp.float32)
    return (xf * jnp.tanh(jax.nn.softplus(xf))).astype(x.dtype)


def _choose_blocks(rows, itemsize):
    """Pick (block_rows, n_blocks) for a (rows, LANES) slab."""
    if rows * LANES * itemsize <= MIN_SPLIT_BYTES:
        # Single block equal to the full array dims: always a legal block shape,
        # regardless of dtype sublane packing.
        return rows, 1
    # At least 2 blocks so the parallel grid axis shards across v7x's 2 TCs.
    half = -(-rows // 2)
    half = -(-half // 32) * 32          # multiple of 32 -> covers f32/bf16/i8 packing
    block_rows = min(BLOCK_ROWS, half)
    n_blocks = -(-rows // block_rows)   # Pallas masks the final partial block
    return block_rows, n_blocks


def mish_pallas(x, donate_input=False):
    """Elementwise Mish over an arbitrarily-shaped array via a tiled Pallas kernel."""
    orig_shape, orig_dtype = x.shape, x.dtype
    total = x.size
    if total == 0:
        return x

    flat = jnp.ravel(x)
    itemsize = jnp.dtype(orig_dtype).itemsize
    bulk = (total // LANES) * LANES
    tail = total - bulk

    if bulk == 0:
        # Fewer than one 512-lane row: not worth a kernel launch.
        return _mish_jnp(flat).reshape(orig_shape)

    rows = bulk // LANES
    block_rows, n_blocks = _choose_blocks(rows, itemsize)

    # Free reshape when total is a multiple of LANES (the common case); only the
    # rare ragged case pays for a prefix slice of the bulk.
    x2d = (flat if tail == 0 else flat[:bulk]).reshape(rows, LANES)

    n_elems = rows * LANES
    cost = pl.CostEstimate(
        flops=10 * n_elems,
        transcendentals=2 * n_elems,          # exp + EUP reciprocal
        bytes_accessed=2 * itemsize * n_elems,
    )

    out2d = pl.pallas_call(
        mish_kernel,
        out_shape=jax.ShapeDtypeStruct((rows, LANES), orig_dtype),
        grid=(n_blocks,),
        in_specs=[pl.BlockSpec((block_rows, LANES), lambda i: (i, 0))],
        out_specs=pl.BlockSpec((block_rows, LANES), lambda i: (i, 0)),
        compiler_params=pltpu.CompilerParams(
            dimension_semantics=("parallel",),
            vmem_limit_bytes=32 * 1024 * 1024,   # headroom for 4 MiB double-buffered in+out
        ),
        cost_estimate=cost,
        # Only alias when the caller actually donates x, otherwise XLA would insert
        # a defensive full copy of the input to satisfy the alias.
        input_output_aliases={0: 0} if donate_input else {},
    )(x2d)

    if tail == 0:
        return out2d.reshape(orig_shape)
    # Rare ragged tail: < 512 elements through plain XLA, then stitch.
    tail_out = _mish_jnp(flat[bulk:])
    return jnp.concatenate([out2d.reshape(-1), tail_out]).reshape(orig_shape)


def mish_ref(x):
    xf = x.astype(jnp.float32)
    return (xf * jnp.tanh(jax.nn.softplus(xf))).astype(x.dtype)


if __name__ == "__main__":
    key = jax.random.PRNGKey(0)
    k1, k2, k3 = jax.random.split(key, 3)

    mish_jit = jax.jit(mish_pallas)

    # 1) Spec-sized input (2*4*16*16 = 2048 = 4*512 -> pure kernel path, no pad/slice).
    x = 3.0 * jax.random.normal(k1, (2, 4, 16, 16), jnp.float32)
    x = x.at[0, 0, 0, 0].set(25.0)    # overflow-guard path (x > 20)
    x = x.at[0, 0, 0, 1].set(-30.0)   # deep-negative path
    x = x.at[0, 0, 0, 2].set(19.5)    # just below the softplus threshold
    out = mish_jit(x)
    jax.block_until_ready(out)
    assert out.shape == x.shape and out.dtype == x.dtype
    d1 = float(jnp.max(jnp.abs(out - mish_ref(x))))
    assert d1 < 1e-3, f"spec-shape mismatch: {d1}"

    # 2) Ragged size (3*5*7*11 = 1155 elems): kernel bulk + tiny plain-XLA tail.
    xr = 3.0 * jax.random.normal(k2, (3, 5, 7, 11), jnp.float32)
    outr = mish_jit(xr)
    jax.block_until_ready(outr)
    d2 = float(jnp.max(jnp.abs(outr - mish_ref(xr))))
    assert outr.shape == xr.shape and d2 < 1e-3, f"ragged-shape mismatch: {d2}"

    # 3) >1 MiB input: multi-block grid (shards across both TCs on v7x).
    xm = 3.0 * jax.random.normal(k3, (2, 16, 9, 32, 32), jnp.float32)
    outm = mish_jit(xm)
    jax.block_until_ready(outm)
    d3 = float(jnp.max(jnp.abs(outm - mish_ref(xm))))
    assert outm.shape == xm.shape and d3 < 1e-3, f"multi-block mismatch: {d3}"

    print("KERNEL_OK")
</pallas_src>

<mosaic_0001>
module attributes {stable_mosaic.version = 11 : i64} {
  func.func @mish_kernel(%arg0: i32, %arg1: memref<4x512xf32, #tpu.memory_space<vmem>>, %arg2: memref<4x512xf32, #tpu.memory_space<vmem>>) attributes {dimension_semantics = [#tpu.dimension_semantics<parallel>], iteration_bounds = array<i64: 1>, scalar_prefetch = 0 : i64, scratch_operands = 0 : i64, tpu.core_type = #tpu.core_type<tc>, window_params = [{transform_indices = @transform_0, window_bounds = array<i64: 4, 512>}, {transform_indices = @transform_1, window_bounds = array<i64: 4, 512>}]} {
    %c0 = arith.constant 0 : index
    %c0_0 = arith.constant 0 : index
    %0 = vector.load %arg1[%c0, %c0_0] : memref<4x512xf32, #tpu.memory_space<vmem>>, vector<4x512xf32>
    %cst = arith.constant 2.000000e+01 : f32
    %1 = vector.broadcast %cst : f32 to vector<4x512xf32>
    %2 = arith.minimumf %0, %1 : vector<4x512xf32>
    %3 = math.exp %2 : vector<4x512xf32>
    %cst_1 = arith.constant 2.000000e+00 : f32
    %4 = vector.broadcast %cst_1 : f32 to vector<4x512xf32>
    %5 = arith.addf %3, %4 : vector<4x512xf32>
    %6 = arith.mulf %3, %5 : vector<4x512xf32>
    %cst_2 = arith.constant 2.000000e+00 : f32
    %7 = vector.broadcast %cst_2 : f32 to vector<4x512xf32>
    %8 = arith.addf %6, %7 : vector<4x512xf32>
    %9 = tpu.reciprocal %8 {approx = true} : vector<4x512xf32> -> vector<4x512xf32>
    %10 = arith.mulf %8, %9 : vector<4x512xf32>
    %cst_3 = arith.constant 2.000000e+00 : f32
    %11 = vector.broadcast %cst_3 : f32 to vector<4x512xf32>
    %12 = arith.subf %11, %10 : vector<4x512xf32>
    %13 = arith.mulf %9, %12 : vector<4x512xf32>
    %cst_4 = arith.constant 2.000000e+01 : f32
    %14 = vector.broadcast %cst_4 : f32 to vector<4x512xf32>
    %15 = arith.cmpf ogt, %0, %14 : vector<4x512xf32>
    %16 = arith.mulf %6, %13 : vector<4x512xf32>
    %cst_5 = arith.constant 1.000000e+00 : f32
    %17 = vector.broadcast %cst_5 : f32 to vector<4x512xf32>
    %18 = arith.select %15, %17, %16 : vector<4x512xi1>, vector<4x512xf32>
    %19 = arith.mulf %0, %18 : vector<4x512xf32>
    %c0_6 = arith.constant 0 : index
    %c0_7 = arith.constant 0 : index
    %20 = vector.load %arg2[%c0_6, %c0_7] : memref<4x512xf32, #tpu.memory_space<vmem>>, vector<4x512xf32>
    tpu.vector_store %arg2[%c0_6, %c0_7], %19 {strides = array<i32>} : memref<4x512xf32, #tpu.memory_space<vmem>>, vector<4x512xf32>,
    return
  }
  func.func @transform_0(%arg0: i32) -> (i32, i32) {
    %c0_i32 = arith.constant 0 : i32
    %c0_i32_0 = arith.constant 0 : i32
    return %arg0, %c0_i32 : i32, i32
  }
  func.func @transform_1(%arg0: i32) -> (i32, i32) {
    %c0_i32 = arith.constant 0 : i32
    %c0_i32_0 = arith.constant 0 : i32
    return %arg0, %c0_i32 : i32, i32
  }
}

</mosaic_0001>

<bundles_post_ra>
// kernel: mish_pallas.1
= control target key start
LH: loop header
LB: loop body
LE: loop exit
PB: predicated region body
PF: predicated region fallthrough
CT: control target
= control target key end

     0   :  { %s74_s0 = inlined_call_operand.vmem [shape: f32[4,512], index: 0, kind: input, shape index: {}]   ;;  %s75_s1 = inlined_call_operand.vmem [shape: f32[4,512], index: 1, kind: output, shape index: {}]  }
   0x1   :  { %v8_v0 = vld [vmem:[%s74_s0] sm:$0xff]  ;;  %v9_v1 = vld [vmem:[%s74_s0 + $0x8] sm:$0xff] }
   0x2   :  { %v10_v2 = vmin.f32 %v8_v0, 20.0  ;;  %v11_v3 = vmin.f32 %v9_v1, 20.0  ;;  %vm30_vm0 = vcmp.gt.f32.partialorder %v8_v0, 20.0  ;;  %vm31_vm1 = vcmp.gt.f32.partialorder %v9_v1, 20.0 }
   0x4   :  { %v12_v4 = vmul.f32 1.442695, %v10_v2  ;;  %v14_v5 = vmul.f32 1.442695, %v11_v3 }
   0x6   :  { %44 = vpow2.f32 %v12_v4 }
   0x7   :  { %46 = vpow2.f32 %v14_v5 }
   0xc   :  { %v45_v6 = vpop.eup %44 }
   0xd   :  { %v47_v7 = vpop.eup %46  ;;  %v16_v8 = vadd.f32 2.0, %v45_v6 }
   0xe   :  { %v17_v9 = vadd.f32 2.0, %v47_v7 }
   0xf   :  { %v18_v10 = vmul.f32 %v45_v6, %v16_v8 }
  0x10   :  { %v19_v11 = vmul.f32 %v47_v7, %v17_v9 }
  0x11   :  { %v20_v12 = vadd.f32 2.0, %v18_v10 }
  0x12   :  { %v21_v13 = vadd.f32 2.0, %v19_v11 }
  0x13   :  { %48 = vrcp.f32 %v20_v12 }
  0x14   :  { %50 = vrcp.f32 %v21_v13 }
  0x19   :  { %v49_v14 = vpop.eup %48 }
  0x1a   :  { %v51_v15 = vpop.eup %50  ;;  %v24_v16 = vmul.f32 %v49_v14, %v20_v12 }
  0x1b   :  { %v25_v17 = vmul.f32 %v51_v15, %v21_v13 }
  0x1c   :  { %v26_v18 = vsub.f32 2.0, %v24_v16 }
  0x1d   :  { %v27_v19 = vsub.f32 2.0, %v25_v17 }
  0x1e   :  { %v28_v20 = vmul.f32 %v49_v14, %v26_v18 }
  0x1f   :  { %v29_v21 = vmul.f32 %v51_v15, %v27_v19 }
  0x20   :  { %v32_v22 = vmul.f32 %v28_v20, %v18_v10 }
  0x21   :  { %v33_v23 = vmul.f32 %v29_v21, %v19_v11 }
  0x22   :  { %v34_v24 = vsel %vm30_vm0, 1.0, %v32_v22 }
  0x23   :  { %v36_v25 = vmul.f32 %v34_v24, %v8_v0  ;;  %v35_v26 = vsel %vm31_vm1, 1.0, %v33_v23 }
  0x24   :  { %v37_v27 = vmul.f32 %v35_v26, %v9_v1 }
  0x25   :  { %38 = vst [vmem:[%s75_s1] sm:$0xff] %v36_v25 }
  0x26   :  { %39 = vst [vmem:[%s75_s1 + $0x8] sm:$0xff] %v37_v27 }

</bundles_post_ra>
